<compile_context>
chip_gen: v7x
topology: tpu7x:2x2x1
jax: 0.10.0
libtpu: 0.0.40
codegen_flags: <defaults>
</compile_context>

<pallas_src>
import functools

import jax
import jax.numpy as jnp
from jax import lax
from jax.experimental import pallas as pl
from jax.experimental.pallas import tpu as pltpu


def _round_up(x, m):
    return ((x + m - 1) // m) * m


def actor_critic_kernel(x_ref, w0_ref, w_ref, aff_ref, hw_ref, hb_ref, out_ref,
                        *, act_dim, approx_gelu):
    """One batch tile of the full ActorCritic forward.

    x_ref  : (b_tile, in_pad) bf16  input (feature lanes >= obs_dim are zero).
    w0_ref : (in_pad, hid)    bf16  layer-0 weight (rows >= obs_dim are zero).
    w_ref  : (3, hid, hid)    bf16  layer 1..3 weights.
    aff_ref: (3, 4, 1, hid)   f32   [bias, gamma, beta] x layer, each row at
                                    sublane 0 of its own (1, hid) plane.
    hw_ref : (hid, out_w)     bf16  fused actor+critic head weights.
    hb_ref : (1, out_w)       f32   fused head bias.
    out_ref: (b_tile, out_w)  f32   lanes [0, act_dim)=probs, lane act_dim=value.
    """

    def layer(h, w, bias, gamma, beta):
        # Linear: bf16 MXU operands, f32 accumulation.
        y = jnp.dot(h, w, preferred_element_type=jnp.float32) + bias
        # LayerNorm(eps=1e-5), two-pass variance (avoids cancellation).
        mu = jnp.mean(y, axis=-1, keepdims=True)
        d = y - mu
        var = jnp.mean(d * d, axis=-1, keepdims=True)
        yn = d * lax.rsqrt(var + 1e-5) * gamma + beta
        if approx_gelu:
            # tanh-approx GELU -> transcendental on the EUP slot (v5e option;
            # numerics differ slightly from PyTorch's default exact-erf GELU).
            g = jax.nn.gelu(yn, approximate=True)
        else:
            # Exact GELU (PyTorch nn.GELU default): 0.5*x*(1+erf(x/sqrt(2))).
            g = 0.5 * yn * (1.0 + lax.erf(yn * 0.7071067811865476))
        # TODO(synk): nn.Dropout(p) training-mode randomness not implemented;
        # eval-mode identity here (would need pltpu.prng_seed/prng_random_bits).
        return g.astype(jnp.bfloat16)

    # Layer 0 uses the narrow (in_pad-wide) input and its own weight block.
    h = layer(x_ref[...], w0_ref[...], aff_ref[0, 0], aff_ref[1, 0], aff_ref[2, 0])
    for l in range(1, 4):  # static unroll over layers 1..3
        h = layer(h, w_ref[l - 1], aff_ref[0, l], aff_ref[1, l], aff_ref[2, l])

    # Fused actor+critic head: one lane-dense matmul + one 128-wide store.
    z = jnp.dot(h, hw_ref[...], preferred_element_type=jnp.float32) + hb_ref[...]
    lane = lax.broadcasted_iota(jnp.int32, z.shape, 1)
    is_logit = lane < act_dim
    logits = jnp.where(is_logit, z, -jnp.inf)          # mask padded lanes
    m = jnp.max(logits, axis=-1, keepdims=True)
    e = jnp.where(is_logit, jnp.exp(logits - m), 0.0)
    probs = e / jnp.sum(e, axis=-1, keepdims=True)     # exact divide
    value_col = jnp.where(lane == act_dim, z, 0.0)
    out_ref[...] = probs + value_col                   # lanes are disjoint


def init_params(key, obs_dim, act_dim, hid):
    """PyTorch-like init; Linear weights stored as (in_features, out_features)."""
    params = {"layers": []}
    in_f = obs_dim
    for _ in range(4):
        key, kw, kb = jax.random.split(key, 3)
        bound = 1.0 / (in_f ** 0.5)
        w = jax.random.uniform(kw, (in_f, hid), jnp.float32, -bound, bound)
        b = jax.random.uniform(kb, (hid,), jnp.float32, -bound, bound)
        params["layers"].append((w, b, jnp.ones((hid,), jnp.float32),
                                 jnp.zeros((hid,), jnp.float32)))
        in_f = hid
    key, kaw, kab, kcw, kcb = jax.random.split(key, 5)
    bound = 1.0 / (hid ** 0.5)
    params["actor_w"] = jax.random.uniform(kaw, (hid, act_dim), jnp.float32, -bound, bound)
    params["actor_b"] = jax.random.uniform(kab, (act_dim,), jnp.float32, -bound, bound)
    params["critic_w"] = jax.random.uniform(kcw, (hid, 1), jnp.float32, -bound, bound)
    params["critic_b"] = jax.random.uniform(kcb, (1,), jnp.float32, -bound, bound)
    return params


def pack_params(params, obs_dim, act_dim, hid):
    """Pack the 21 per-layer tensors into 5 DMA-friendly arrays."""
    assert act_dim >= 1
    in_pad = _round_up(obs_dim, 128)
    out_w = _round_up(act_dim + 1, 128)

    w0 = jnp.zeros((in_pad, hid), jnp.float32)
    w0 = w0.at[:obs_dim, :].set(params["layers"][0][0])          # zero-padded rows
    w_stack = jnp.stack([params["layers"][l][0] for l in range(1, 4)])  # (3,hid,hid)

    # bias / gamma / beta each at sublane 0 of their own (1, hid) plane.
    aff = jnp.stack([
        jnp.stack([params["layers"][l][k] for l in range(4)])    # (4, hid)
        for k in (1, 2, 3)
    ]).reshape(3, 4, 1, hid)

    head_w = jnp.zeros((hid, out_w), jnp.float32)
    head_w = head_w.at[:, :act_dim].set(params["actor_w"])
    head_w = head_w.at[:, act_dim:act_dim + 1].set(params["critic_w"])
    head_b = jnp.zeros((1, out_w), jnp.float32)
    head_b = head_b.at[0, :act_dim].set(params["actor_b"])
    head_b = head_b.at[0, act_dim].set(params["critic_b"][0])

    return (w0.astype(jnp.bfloat16), w_stack.astype(jnp.bfloat16), aff,
            head_w.astype(jnp.bfloat16), head_b)


@functools.partial(jax.jit, static_argnames=("act_dim", "approx_gelu"))
def actor_critic_forward(x, w0, w_stack, aff, head_w, head_b, *, act_dim,
                         approx_gelu=False):
    B, obs_dim = x.shape
    in_pad, hid = w0.shape
    out_w = head_w.shape[-1]
    assert act_dim >= 1 and act_dim + 1 <= out_w
    assert obs_dim <= in_pad

    # Batch tiling: 16-row multiples, right-sized tiles, >=2 tiles once
    # b_pad >= 32 (both v7x TensorCores run), cap 512 (overhead amortization).
    b_pad = _round_up(B, 16)
    tile_cap = 512
    n_tiles = max(2 if b_pad >= 32 else 1, -(-b_pad // tile_cap))
    b_tile = min(tile_cap, _round_up(-(-b_pad // n_tiles), 16))
    n_tiles = -(-b_pad // b_tile)
    b_pad = n_tiles * b_tile

    # Single pad op (batch rows + feature lanes); no full zeros/set slab.
    x_pad = jnp.pad(x.astype(jnp.bfloat16),
                    ((0, b_pad - B), (0, in_pad - obs_dim)))

    # Explicit VMEM budget: single-buffered params + double-buffered x/out
    # tiles + f32 activation temps, with 2x headroom, clamped to [8, 64] MiB.
    param_bytes = (in_pad * hid * 2 + 3 * hid * hid * 2
                   + 3 * 4 * 8 * max(hid, 128) * 4
                   + hid * out_w * 2 + 8 * out_w * 4)
    io_bytes = 2 * (b_tile * in_pad * 2 + b_tile * out_w * 4)
    act_bytes = 8 * b_tile * max(hid, 128) * 4
    vmem_limit = int(min(max(2 * (param_bytes + io_bytes + act_bytes),
                             8 * 1024 * 1024), 64 * 1024 * 1024))

    kernel = functools.partial(actor_critic_kernel, act_dim=act_dim,
                               approx_gelu=approx_gelu)

    def param_spec(shape):
        # Grid-invariant parameter: constant index_map, single-buffered.
        return pl.BlockSpec(shape, lambda i: (0,) * len(shape),
                            pipeline_mode=pl.Buffered(1))

    out = pl.pallas_call(
        kernel,
        out_shape=jax.ShapeDtypeStruct((b_pad, out_w), jnp.float32),
        grid=(n_tiles,),
        in_specs=[
            pl.BlockSpec((b_tile, in_pad), lambda i: (i, 0)),   # x: batch-tiled
            param_spec((in_pad, hid)),                          # layer-0 weight
            param_spec((3, hid, hid)),                          # layers 1..3
            param_spec((3, 4, 1, hid)),                         # bias/gamma/beta
            param_spec((hid, out_w)),                           # fused head W
            param_spec((1, out_w)),                             # fused head b
        ],
        out_specs=pl.BlockSpec((b_tile, out_w), lambda i: (i, 0)),
        compiler_params=pltpu.CompilerParams(
            dimension_semantics=("parallel",),
            vmem_limit_bytes=vmem_limit),
    )(x_pad, w0, w_stack, aff, head_w, head_b)

    probs = out[:B, :act_dim]
    value = out[:B, act_dim]
    return probs, value


def reference_forward(x, params):
    """Pure-JAX f32 reference (matches the PyTorch module in eval mode)."""
    h = x
    for (w, b, gamma, beta) in params["layers"]:
        y = h @ w + b
        mu = jnp.mean(y, -1, keepdims=True)
        var = jnp.mean((y - mu) ** 2, -1, keepdims=True)
        yn = (y - mu) / jnp.sqrt(var + 1e-5) * gamma + beta
        h = 0.5 * yn * (1.0 + lax.erf(yn / jnp.sqrt(2.0)))
    logits = h @ params["actor_w"] + params["actor_b"]
    probs = jax.nn.softmax(logits, axis=-1)
    value = (h @ params["critic_w"] + params["critic_b"])[:, 0]
    return probs, value


if __name__ == "__main__":
    # Small demo shapes.  For production configs keep hid a multiple of 128
    # (ideally 256) so each hid x hid matmul fills the MXU.
    B, OBS_DIM, ACT_DIM, HID = 8, 17, 6, 32

    key = jax.random.PRNGKey(0)
    key, kx = jax.random.split(key)
    x = jax.random.normal(kx, (B, OBS_DIM), jnp.float32)

    params = init_params(key, OBS_DIM, ACT_DIM, HID)
    packed = pack_params(params, OBS_DIM, ACT_DIM, HID)

    probs, value = actor_critic_forward(x, *packed, act_dim=ACT_DIM)
    jax.block_until_ready((probs, value))

    assert probs.shape == (B, ACT_DIM)
    assert value.shape == (B,)
    assert bool(jnp.all(jnp.isfinite(probs))) and bool(jnp.all(jnp.isfinite(value)))
    # softmax rows sum to ~1 (exact divide; tolerance only for f32 rounding)
    assert bool(jnp.allclose(jnp.sum(probs, axis=-1), 1.0, atol=1e-3))

    # cross-check against the pure-JAX f32 reference (loose tol: bf16 MXU operands)
    ref_probs, ref_value = reference_forward(x, params)
    assert bool(jnp.allclose(probs, ref_probs, atol=5e-2))
    assert bool(jnp.allclose(value, ref_value, atol=5e-2, rtol=5e-2))

    print("KERNEL_OK")
</pallas_src>

<mosaic_0001>
module attributes {stable_mosaic.version = 11 : i64} {
  func.func @actor_critic_kernel(%arg0: i32, %arg1: memref<16x128xbf16, #tpu.memory_space<vmem>>, %arg2: memref<128x32xbf16, #tpu.memory_space<vmem>>, %arg3: memref<3x32x32xbf16, #tpu.memory_space<vmem>>, %arg4: memref<3x4x1x32xf32, #tpu.memory_space<vmem>>, %arg5: memref<32x128xbf16, #tpu.memory_space<vmem>>, %arg6: memref<1x128xf32, #tpu.memory_space<vmem>>, %arg7: memref<16x128xf32, #tpu.memory_space<vmem>>) attributes {dimension_semantics = [#tpu.dimension_semantics<parallel>], iteration_bounds = array<i64: 1>, scalar_prefetch = 0 : i64, scratch_operands = 0 : i64, tpu.core_type = #tpu.core_type<tc>, window_params = [{transform_indices = @transform_0, window_bounds = array<i64: 16, 128>}, {pipeline_mode = #tpu.pipeline_mode<synchronous>, transform_indices = @transform_1, window_bounds = array<i64: 128, 32>}, {pipeline_mode = #tpu.pipeline_mode<synchronous>, transform_indices = @transform_2, window_bounds = array<i64: 3, 32, 32>}, {pipeline_mode = #tpu.pipeline_mode<synchronous>, transform_indices = @transform_3, window_bounds = array<i64: 3, 4, 1, 32>}, {pipeline_mode = #tpu.pipeline_mode<synchronous>, transform_indices = @transform_4, window_bounds = array<i64: 32, 128>}, {pipeline_mode = #tpu.pipeline_mode<synchronous>, transform_indices = @transform_5, window_bounds = array<i64: 1, 128>}, {transform_indices = @transform_6, window_bounds = array<i64: 16, 128>}]} {
    %c0 = arith.constant 0 : index
    %c0_0 = arith.constant 0 : index
    %0 = vector.load %arg1[%c0, %c0_0] : memref<16x128xbf16, #tpu.memory_space<vmem>>, vector<16x128xbf16>
    %c0_1 = arith.constant 0 : index
    %c0_2 = arith.constant 0 : index
    %1 = vector.load %arg2[%c0_1, %c0_2] : memref<128x32xbf16, #tpu.memory_space<vmem>>, vector<128x32xbf16>
    %c0_3 = arith.constant 0 : index
    %c0_4 = arith.constant 0 : index
    %c0_5 = arith.constant 0 : index
    %c0_6 = arith.constant 0 : index
    %2 = vector.load %arg4[%c0_3, %c0_4, %c0_5, %c0_6] : memref<3x4x1x32xf32, #tpu.memory_space<vmem>>, vector<1x1x1x32xf32>
    %3 = vector.shape_cast %2 : vector<1x1x1x32xf32> to vector<1x32xf32>
    %c1 = arith.constant 1 : index
    %c0_7 = arith.constant 0 : index
    %c0_8 = arith.constant 0 : index
    %c0_9 = arith.constant 0 : index
    %4 = vector.load %arg4[%c1, %c0_7, %c0_8, %c0_9] : memref<3x4x1x32xf32, #tpu.memory_space<vmem>>, vector<1x1x1x32xf32>
    %5 = vector.shape_cast %4 : vector<1x1x1x32xf32> to vector<1x32xf32>
    %c2 = arith.constant 2 : index
    %c0_10 = arith.constant 0 : index
    %c0_11 = arith.constant 0 : index
    %c0_12 = arith.constant 0 : index
    %6 = vector.load %arg4[%c2, %c0_10, %c0_11, %c0_12] : memref<3x4x1x32xf32, #tpu.memory_space<vmem>>, vector<1x1x1x32xf32>
    %7 = vector.shape_cast %6 : vector<1x1x1x32xf32> to vector<1x32xf32>
    %cst = arith.constant dense<0.000000e+00> : vector<16x32xf32>
    %8 = tpu.matmul %0, %1, %cst {dimension_numbers = #tpu.dot_dimension_numbers<[1], [0], [0], [1], [0, 0, 1, 1], [], []>} : vector<16x128xbf16>, vector<128x32xbf16>, vector<16x32xf32> -> vector<16x32xf32>
    %9 = vector.broadcast %3 : vector<1x32xf32> to vector<16x32xf32>
    %10 = arith.addf %8, %9 : vector<16x32xf32>
    %cst_13 = arith.constant dense<0.000000e+00> : vector<16xf32>
    %11 = vector.multi_reduction <add>, %10, %cst_13 [1] : vector<16x32xf32> to vector<16xf32>
    %12 = vector.shape_cast %11 : vector<16xf32> to vector<16x1xf32>
    %cst_14 = arith.constant 3.200000e+01 : f32
    %13 = vector.broadcast %cst_14 : f32 to vector<16x1xf32>
    %14 = arith.divf %12, %13 : vector<16x1xf32>
    %15 = vector.broadcast %14 : vector<16x1xf32> to vector<16x32xf32>
    %16 = arith.subf %10, %15 : vector<16x32xf32>
    %17 = arith.mulf %16, %16 : vector<16x32xf32>
    %cst_15 = arith.constant dense<0.000000e+00> : vector<16xf32>
    %18 = vector.multi_reduction <add>, %17, %cst_15 [1] : vector<16x32xf32> to vector<16xf32>
    %19 = vector.shape_cast %18 : vector<16xf32> to vector<16x1xf32>
    %cst_16 = arith.constant 3.200000e+01 : f32
    %20 = vector.broadcast %cst_16 : f32 to vector<16x1xf32>
    %21 = arith.divf %19, %20 : vector<16x1xf32>
    %cst_17 = arith.constant 9.99999974E-6 : f32
    %22 = vector.broadcast %cst_17 : f32 to vector<16x1xf32>
    %23 = arith.addf %21, %22 : vector<16x1xf32>
    %24 = math.rsqrt %23 : vector<16x1xf32>
    %25 = vector.broadcast %24 : vector<16x1xf32> to vector<16x32xf32>
    %26 = arith.mulf %16, %25 : vector<16x32xf32>
    %27 = vector.broadcast %5 : vector<1x32xf32> to vector<16x32xf32>
    %28 = arith.mulf %26, %27 : vector<16x32xf32>
    %29 = vector.broadcast %7 : vector<1x32xf32> to vector<16x32xf32>
    %30 = arith.addf %28, %29 : vector<16x32xf32>
    %cst_18 = arith.constant 5.000000e-01 : f32
    %31 = vector.broadcast %cst_18 : f32 to vector<16x32xf32>
    %32 = arith.mulf %31, %30 : vector<16x32xf32>
    %cst_19 = arith.constant 0.707106769 : f32
    %33 = vector.broadcast %cst_19 : f32 to vector<16x32xf32>
    %34 = arith.mulf %30, %33 : vector<16x32xf32>
    %35 = math.erf %34 : vector<16x32xf32>
    %cst_20 = arith.constant 1.000000e+00 : f32
    %36 = vector.broadcast %cst_20 : f32 to vector<16x32xf32>
    %37 = arith.addf %36, %35 : vector<16x32xf32>
    %38 = arith.mulf %32, %37 : vector<16x32xf32>
    %39 = arith.truncf %38 : vector<16x32xf32> to vector<16x32xbf16>
    %c0_21 = arith.constant 0 : index
    %c0_22 = arith.constant 0 : index
    %c0_23 = arith.constant 0 : index
    %40 = vector.load %arg3[%c0_21, %c0_22, %c0_23] : memref<3x32x32xbf16, #tpu.memory_space<vmem>>, vector<1x32x32xbf16>
    %41 = vector.shape_cast %40 : vector<1x32x32xbf16> to vector<32x32xbf16>
    %c0_24 = arith.constant 0 : index
    %c1_25 = arith.constant 1 : index
    %c0_26 = arith.constant 0 : index
    %c0_27 = arith.constant 0 : index
    %42 = vector.load %arg4[%c0_24, %c1_25, %c0_26, %c0_27] : memref<3x4x1x32xf32, #tpu.memory_space<vmem>>, vector<1x1x1x32xf32>
    %43 = vector.shape_cast %42 : vector<1x1x1x32xf32> to vector<1x32xf32>
    %c1_28 = arith.constant 1 : index
    %c1_29 = arith.constant 1 : index
    %c0_30 = arith.constant 0 : index
    %c0_31 = arith.constant 0 : index
    %44 = vector.load %arg4[%c1_28, %c1_29, %c0_30, %c0_31] : memref<3x4x1x32xf32, #tpu.memory_space<vmem>>, vector<1x1x1x32xf32>
    %45 = vector.shape_cast %44 : vector<1x1x1x32xf32> to vector<1x32xf32>
    %c2_32 = arith.constant 2 : index
    %c1_33 = arith.constant 1 : index
    %c0_34 = arith.constant 0 : index
    %c0_35 = arith.constant 0 : index
    %46 = vector.load %arg4[%c2_32, %c1_33, %c0_34, %c0_35] : memref<3x4x1x32xf32, #tpu.memory_space<vmem>>, vector<1x1x1x32xf32>
    %47 = vector.shape_cast %46 : vector<1x1x1x32xf32> to vector<1x32xf32>
    %cst_36 = arith.constant dense<0.000000e+00> : vector<16x32xf32>
    %48 = tpu.matmul %39, %41, %cst_36 {dimension_numbers = #tpu.dot_dimension_numbers<[1], [0], [0], [1], [0, 0, 1, 1], [], []>} : vector<16x32xbf16>, vector<32x32xbf16>, vector<16x32xf32> -> vector<16x32xf32>
    %49 = vector.broadcast %43 : vector<1x32xf32> to vector<16x32xf32>
    %50 = arith.addf %48, %49 : vector<16x32xf32>
    %cst_37 = arith.constant dense<0.000000e+00> : vector<16xf32>
    %51 = vector.multi_reduction <add>, %50, %cst_37 [1] : vector<16x32xf32> to vector<16xf32>
    %52 = vector.shape_cast %51 : vector<16xf32> to vector<16x1xf32>
    %cst_38 = arith.constant 3.200000e+01 : f32
    %53 = vector.broadcast %cst_38 : f32 to vector<16x1xf32>
    %54 = arith.divf %52, %53 : vector<16x1xf32>
    %55 = vector.broadcast %54 : vector<16x1xf32> to vector<16x32xf32>
    %56 = arith.subf %50, %55 : vector<16x32xf32>
    %57 = arith.mulf %56, %56 : vector<16x32xf32>
    %cst_39 = arith.constant dense<0.000000e+00> : vector<16xf32>
    %58 = vector.multi_reduction <add>, %57, %cst_39 [1] : vector<16x32xf32> to vector<16xf32>
    %59 = vector.shape_cast %58 : vector<16xf32> to vector<16x1xf32>
    %cst_40 = arith.constant 3.200000e+01 : f32
    %60 = vector.broadcast %cst_40 : f32 to vector<16x1xf32>
    %61 = arith.divf %59, %60 : vector<16x1xf32>
    %cst_41 = arith.constant 9.99999974E-6 : f32
    %62 = vector.broadcast %cst_41 : f32 to vector<16x1xf32>
    %63 = arith.addf %61, %62 : vector<16x1xf32>
    %64 = math.rsqrt %63 : vector<16x1xf32>
    %65 = vector.broadcast %64 : vector<16x1xf32> to vector<16x32xf32>
    %66 = arith.mulf %56, %65 : vector<16x32xf32>
    %67 = vector.broadcast %45 : vector<1x32xf32> to vector<16x32xf32>
    %68 = arith.mulf %66, %67 : vector<16x32xf32>
    %69 = vector.broadcast %47 : vector<1x32xf32> to vector<16x32xf32>
    %70 = arith.addf %68, %69 : vector<16x32xf32>
    %cst_42 = arith.constant 5.000000e-01 : f32
    %71 = vector.broadcast %cst_42 : f32 to vector<16x32xf32>
    %72 = arith.mulf %71, %70 : vector<16x32xf32>
    %cst_43 = arith.constant 0.707106769 : f32
    %73 = vector.broadcast %cst_43 : f32 to vector<16x32xf32>
    %74 = arith.mulf %70, %73 : vector<16x32xf32>
    %75 = math.erf %74 : vector<16x32xf32>
    %cst_44 = arith.constant 1.000000e+00 : f32
    %76 = vector.broadcast %cst_44 : f32 to vector<16x32xf32>
    %77 = arith.addf %76, %75 : vector<16x32xf32>
    %78 = arith.mulf %72, %77 : vector<16x32xf32>
    %79 = arith.truncf %78 : vector<16x32xf32> to vector<16x32xbf16>
    %c1_45 = arith.constant 1 : index
    %c0_46 = arith.constant 0 : index
    %c0_47 = arith.constant 0 : index
    %80 = vector.load %arg3[%c1_45, %c0_46, %c0_47] : memref<3x32x32xbf16, #tpu.memory_space<vmem>>, vector<1x32x32xbf16>
    %81 = vector.shape_cast %80 : vector<1x32x32xbf16> to vector<32x32xbf16>
    %c0_48 = arith.constant 0 : index
    %c2_49 = arith.constant 2 : index
    %c0_50 = arith.constant 0 : index
    %c0_51 = arith.constant 0 : index
    %82 = vector.load %arg4[%c0_48, %c2_49, %c0_50, %c0_51] : memref<3x4x1x32xf32, #tpu.memory_space<vmem>>, vector<1x1x1x32xf32>
    %83 = vector.shape_cast %82 : vector<1x1x1x32xf32> to vector<1x32xf32>
    %c1_52 = arith.constant 1 : index
    %c2_53 = arith.constant 2 : index
    %c0_54 = arith.constant 0 : index
    %c0_55 = arith.constant 0 : index
    %84 = vector.load %arg4[%c1_52, %c2_53, %c0_54, %c0_55] : memref<3x4x1x32xf32, #tpu.memory_space<vmem>>, vector<1x1x1x32xf32>
    %85 = vector.shape_cast %84 : vector<1x1x1x32xf32> to vector<1x32xf32>
    %c2_56 = arith.constant 2 : index
    %c2_57 = arith.constant 2 : index
    %c0_58 = arith.constant 0 : index
    %c0_59 = arith.constant 0 : index
    %86 = vector.load %arg4[%c2_56, %c2_57, %c0_58, %c0_59] : memref<3x4x1x32xf32, #tpu.memory_space<vmem>>, vector<1x1x1x32xf32>
    %87 = vector.shape_cast %86 : vector<1x1x1x32xf32> to vector<1x32xf32>
    %cst_60 = arith.constant dense<0.000000e+00> : vector<16x32xf32>
    %88 = tpu.matmul %79, %81, %cst_60 {dimension_numbers = #tpu.dot_dimension_numbers<[1], [0], [0], [1], [0, 0, 1, 1], [], []>} : vector<16x32xbf16>, vector<32x32xbf16>, vector<16x32xf32> -> vector<16x32xf32>
    %89 = vector.broadcast %83 : vector<1x32xf32> to vector<16x32xf32>
    %90 = arith.addf %88, %89 : vector<16x32xf32>
    %cst_61 = arith.constant dense<0.000000e+00> : vector<16xf32>
    %91 = vector.multi_reduction <add>, %90, %cst_61 [1] : vector<16x32xf32> to vector<16xf32>
    %92 = vector.shape_cast %91 : vector<16xf32> to vector<16x1xf32>
    %cst_62 = arith.constant 3.200000e+01 : f32
    %93 = vector.broadcast %cst_62 : f32 to vector<16x1xf32>
    %94 = arith.divf %92, %93 : vector<16x1xf32>
    %95 = vector.broadcast %94 : vector<16x1xf32> to vector<16x32xf32>
    %96 = arith.subf %90, %95 : vector<16x32xf32>
    %97 = arith.mulf %96, %96 : vector<16x32xf32>
    %cst_63 = arith.constant dense<0.000000e+00> : vector<16xf32>
    %98 = vector.multi_reduction <add>, %97, %cst_63 [1] : vector<16x32xf32> to vector<16xf32>
    %99 = vector.shape_cast %98 : vector<16xf32> to vector<16x1xf32>
    %cst_64 = arith.constant 3.200000e+01 : f32
    %100 = vector.broadcast %cst_64 : f32 to vector<16x1xf32>
    %101 = arith.divf %99, %100 : vector<16x1xf32>
    %cst_65 = arith.constant 9.99999974E-6 : f32
    %102 = vector.broadcast %cst_65 : f32 to vector<16x1xf32>
    %103 = arith.addf %101, %102 : vector<16x1xf32>
    %104 = math.rsqrt %103 : vector<16x1xf32>
    %105 = vector.broadcast %104 : vector<16x1xf32> to vector<16x32xf32>
    %106 = arith.mulf %96, %105 : vector<16x32xf32>
    %107 = vector.broadcast %85 : vector<1x32xf32> to vector<16x32xf32>
    %108 = arith.mulf %106, %107 : vector<16x32xf32>
    %109 = vector.broadcast %87 : vector<1x32xf32> to vector<16x32xf32>
    %110 = arith.addf %108, %109 : vector<16x32xf32>
    %cst_66 = arith.constant 5.000000e-01 : f32
    %111 = vector.broadcast %cst_66 : f32 to vector<16x32xf32>
    %112 = arith.mulf %111, %110 : vector<16x32xf32>
    %cst_67 = arith.constant 0.707106769 : f32
    %113 = vector.broadcast %cst_67 : f32 to vector<16x32xf32>
    %114 = arith.mulf %110, %113 : vector<16x32xf32>
    %115 = math.erf %114 : vector<16x32xf32>
    %cst_68 = arith.constant 1.000000e+00 : f32
    %116 = vector.broadcast %cst_68 : f32 to vector<16x32xf32>
    %117 = arith.addf %116, %115 : vector<16x32xf32>
    %118 = arith.mulf %112, %117 : vector<16x32xf32>
    %119 = arith.truncf %118 : vector<16x32xf32> to vector<16x32xbf16>
    %c2_69 = arith.constant 2 : index
    %c0_70 = arith.constant 0 : index
    %c0_71 = arith.constant 0 : index
    %120 = vector.load %arg3[%c2_69, %c0_70, %c0_71] : memref<3x32x32xbf16, #tpu.memory_space<vmem>>, vector<1x32x32xbf16>
    %121 = vector.shape_cast %120 : vector<1x32x32xbf16> to vector<32x32xbf16>
    %c0_72 = arith.constant 0 : index
    %c3 = arith.constant 3 : index
    %c0_73 = arith.constant 0 : index
    %c0_74 = arith.constant 0 : index
    %122 = vector.load %arg4[%c0_72, %c3, %c0_73, %c0_74] : memref<3x4x1x32xf32, #tpu.memory_space<vmem>>, vector<1x1x1x32xf32>
    %123 = vector.shape_cast %122 : vector<1x1x1x32xf32> to vector<1x32xf32>
    %c1_75 = arith.constant 1 : index
    %c3_76 = arith.constant 3 : index
    %c0_77 = arith.constant 0 : index
    %c0_78 = arith.constant 0 : index
    %124 = vector.load %arg4[%c1_75, %c3_76, %c0_77, %c0_78] : memref<3x4x1x32xf32, #tpu.memory_space<vmem>>, vector<1x1x1x32xf32>
    %125 = vector.shape_cast %124 : vector<1x1x1x32xf32> to vector<1x32xf32>
    %c2_79 = arith.constant 2 : index
    %c3_80 = arith.constant 3 : index
    %c0_81 = arith.constant 0 : index
    %c0_82 = arith.constant 0 : index
    %126 = vector.load %arg4[%c2_79, %c3_80, %c0_81, %c0_82] : memref<3x4x1x32xf32, #tpu.memory_space<vmem>>, vector<1x1x1x32xf32>
    %127 = vector.shape_cast %126 : vector<1x1x1x32xf32> to vector<1x32xf32>
    %cst_83 = arith.constant dense<0.000000e+00> : vector<16x32xf32>
    %128 = tpu.matmul %119, %121, %cst_83 {dimension_numbers = #tpu.dot_dimension_numbers<[1], [0], [0], [1], [0, 0, 1, 1], [], []>} : vector<16x32xbf16>, vector<32x32xbf16>, vector<16x32xf32> -> vector<16x32xf32>
    %129 = vector.broadcast %123 : vector<1x32xf32> to vector<16x32xf32>
    %130 = arith.addf %128, %129 : vector<16x32xf32>
    %cst_84 = arith.constant dense<0.000000e+00> : vector<16xf32>
    %131 = vector.multi_reduction <add>, %130, %cst_84 [1] : vector<16x32xf32> to vector<16xf32>
    %132 = vector.shape_cast %131 : vector<16xf32> to vector<16x1xf32>
    %cst_85 = arith.constant 3.200000e+01 : f32
    %133 = vector.broadcast %cst_85 : f32 to vector<16x1xf32>
    %134 = arith.divf %132, %133 : vector<16x1xf32>
    %135 = vector.broadcast %134 : vector<16x1xf32> to vector<16x32xf32>
    %136 = arith.subf %130, %135 : vector<16x32xf32>
    %137 = arith.mulf %136, %136 : vector<16x32xf32>
    %cst_86 = arith.constant dense<0.000000e+00> : vector<16xf32>
    %138 = vector.multi_reduction <add>, %137, %cst_86 [1] : vector<16x32xf32> to vector<16xf32>
    %139 = vector.shape_cast %138 : vector<16xf32> to vector<16x1xf32>
    %cst_87 = arith.constant 3.200000e+01 : f32
    %140 = vector.broadcast %cst_87 : f32 to vector<16x1xf32>
    %141 = arith.divf %139, %140 : vector<16x1xf32>
    %cst_88 = arith.constant 9.99999974E-6 : f32
    %142 = vector.broadcast %cst_88 : f32 to vector<16x1xf32>
    %143 = arith.addf %141, %142 : vector<16x1xf32>
    %144 = math.rsqrt %143 : vector<16x1xf32>
    %145 = vector.broadcast %144 : vector<16x1xf32> to vector<16x32xf32>
    %146 = arith.mulf %136, %145 : vector<16x32xf32>
    %147 = vector.broadcast %125 : vector<1x32xf32> to vector<16x32xf32>
    %148 = arith.mulf %146, %147 : vector<16x32xf32>
    %149 = vector.broadcast %127 : vector<1x32xf32> to vector<16x32xf32>
    %150 = arith.addf %148, %149 : vector<16x32xf32>
    %cst_89 = arith.constant 5.000000e-01 : f32
    %151 = vector.broadcast %cst_89 : f32 to vector<16x32xf32>
    %152 = arith.mulf %151, %150 : vector<16x32xf32>
    %cst_90 = arith.constant 0.707106769 : f32
    %153 = vector.broadcast %cst_90 : f32 to vector<16x32xf32>
    %154 = arith.mulf %150, %153 : vector<16x32xf32>
    %155 = math.erf %154 : vector<16x32xf32>
    %cst_91 = arith.constant 1.000000e+00 : f32
    %156 = vector.broadcast %cst_91 : f32 to vector<16x32xf32>
    %157 = arith.addf %156, %155 : vector<16x32xf32>
    %158 = arith.mulf %152, %157 : vector<16x32xf32>
    %159 = arith.truncf %158 : vector<16x32xf32> to vector<16x32xbf16>
    %c0_92 = arith.constant 0 : index
    %c0_93 = arith.constant 0 : index
    %160 = vector.load %arg5[%c0_92, %c0_93] : memref<32x128xbf16, #tpu.memory_space<vmem>>, vector<32x128xbf16>
    %cst_94 = arith.constant dense<0.000000e+00> : vector<16x128xf32>
    %161 = tpu.matmul %159, %160, %cst_94 {dimension_numbers = #tpu.dot_dimension_numbers<[1], [0], [0], [1], [0, 0, 1, 1], [], []>} : vector<16x32xbf16>, vector<32x128xbf16>, vector<16x128xf32> -> vector<16x128xf32>
    %c0_95 = arith.constant 0 : index
    %c0_96 = arith.constant 0 : index
    %162 = vector.load %arg6[%c0_95, %c0_96] : memref<1x128xf32, #tpu.memory_space<vmem>>, vector<1x128xf32>
    %163 = vector.broadcast %162 : vector<1x128xf32> to vector<16x128xf32>
    %164 = arith.addf %161, %163 : vector<16x128xf32>
    %165 = tpu.iota {dimensions = array<i32: 1>} : vector<16x128xi32>
    %c6_i32 = arith.constant 6 : i32
    %166 = vector.broadcast %c6_i32 : i32 to vector<16x128xi32>
    %167 = arith.cmpi slt, %165, %166 : vector<16x128xi32>
    %cst_97 = arith.constant 0xFF800000 : f32
    %168 = vector.broadcast %cst_97 : f32 to vector<16x128xf32>
    %169 = arith.select %167, %164, %168 : vector<16x128xi1>, vector<16x128xf32>
    %cst_98 = arith.constant dense<0xFF800000> : vector<16xf32>
    %170 = vector.multi_reduction <maximumf>, %169, %cst_98 [1] : vector<16x128xf32> to vector<16xf32>
    %171 = vector.shape_cast %170 : vector<16xf32> to vector<16x1xf32>
    %172 = vector.broadcast %171 : vector<16x1xf32> to vector<16x128xf32>
    %173 = arith.subf %169, %172 : vector<16x128xf32>
    %174 = math.exp %173 : vector<16x128xf32>
    %cst_99 = arith.constant 0.000000e+00 : f32
    %175 = vector.broadcast %cst_99 : f32 to vector<16x128xf32>
    %176 = arith.select %167, %174, %175 : vector<16x128xi1>, vector<16x128xf32>
    %cst_100 = arith.constant dense<0.000000e+00> : vector<16xf32>
    %177 = vector.multi_reduction <add>, %176, %cst_100 [1] : vector<16x128xf32> to vector<16xf32>
    %178 = vector.shape_cast %177 : vector<16xf32> to vector<16x1xf32>
    %179 = vector.broadcast %178 : vector<16x1xf32> to vector<16x128xf32>
    %180 = arith.divf %176, %179 : vector<16x128xf32>
    %c6_i32_101 = arith.constant 6 : i32
    %181 = vector.broadcast %c6_i32_101 : i32 to vector<16x128xi32>
    %182 = arith.cmpi eq, %165, %181 : vector<16x128xi32>
    %cst_102 = arith.constant 0.000000e+00 : f32
    %183 = vector.broadcast %cst_102 : f32 to vector<16x128xf32>
    %184 = arith.select %182, %164, %183 : vector<16x128xi1>, vector<16x128xf32>
    %185 = arith.addf %180, %184 : vector<16x128xf32>
    %c0_103 = arith.constant 0 : index
    %c0_104 = arith.constant 0 : index
    %186 = vector.load %arg7[%c0_103, %c0_104] : memref<16x128xf32, #tpu.memory_space<vmem>>, vector<16x128xf32>
    tpu.vector_store %arg7[%c0_103, %c0_104], %185 {strides = array<i32>} : memref<16x128xf32, #tpu.memory_space<vmem>>, vector<16x128xf32>,
    return
  }
  func.func @transform_0(%arg0: i32) -> (i32, i32) {
    %c0_i32 = arith.constant 0 : i32
    %c0_i32_0 = arith.constant 0 : i32
    return %arg0, %c0_i32 : i32, i32
  }
  func.func @transform_1(%arg0: i32) -> (i32, i32) {
    %c0_i32 = arith.constant 0 : i32
    %c0_i32_0 = arith.constant 0 : i32
    %c0_i32_1 = arith.constant 0 : i32
    return %c0_i32, %c0_i32_0 : i32, i32
  }
  func.func @transform_2(%arg0: i32) -> (i32, i32, i32) {
    %c0_i32 = arith.constant 0 : i32
    %c0_i32_0 = arith.constant 0 : i32
    %c0_i32_1 = arith.constant 0 : i32
    %c0_i32_2 = arith.constant 0 : i32
    return %c0_i32, %c0_i32_0, %c0_i32_1 : i32, i32, i32
  }
  func.func @transform_3(%arg0: i32) -> (i32, i32, i32, i32) {
    %c0_i32 = arith.constant 0 : i32
    %c0_i32_0 = arith.constant 0 : i32
    %c0_i32_1 = arith.constant 0 : i32
    %c0_i32_2 = arith.constant 0 : i32
    %c0_i32_3 = arith.constant 0 : i32
    return %c0_i32, %c0_i32_0, %c0_i32_1, %c0_i32_2 : i32, i32, i32, i32
  }
  func.func @transform_4(%arg0: i32) -> (i32, i32) {
    %c0_i32 = arith.constant 0 : i32
    %c0_i32_0 = arith.constant 0 : i32
    %c0_i32_1 = arith.constant 0 : i32
    return %c0_i32, %c0_i32_0 : i32, i32
  }
  func.func @transform_5(%arg0: i32) -> (i32, i32) {
    %c0_i32 = arith.constant 0 : i32
    %c0_i32_0 = arith.constant 0 : i32
    %c0_i32_1 = arith.constant 0 : i32
    return %c0_i32, %c0_i32_0 : i32, i32
  }
  func.func @transform_6(%arg0: i32) -> (i32, i32) {
    %c0_i32 = arith.constant 0 : i32
    %c0_i32_0 = arith.constant 0 : i32
    return %arg0, %c0_i32 : i32, i32
  }
}

</mosaic_0001>

<bundles_post_ra>
// kernel: actor_critic_forward.1
= control target key start
LH: loop header
LB: loop body
LE: loop exit
PB: predicated region body
PF: predicated region fallthrough
CT: control target
= control target key end

     0   :  { %v868_v0 = vmov 0.0   ;;  %vm869_vm0 = vmmov 0   ;;  %vm148_vm1 = vcmask 261120   ;;  %s1051_s1 = inlined_call_operand.vmem [shape: bf16[128,32], index: 1, kind: input, shape index: {}]   ;;  %s1052_s0 = inlined_call_operand.vmem [shape: bf16[16,128], index: 0, kind: input, shape index: {}]   ;;  %s1053_s3 = inlined_call_operand.vmem [shape: f32[3,4,1,32], index: 3, kind: input, shape index: {}]   ;;  %s1054_s2 = inlined_call_operand.vmem [shape: bf16[3,32,32], index: 2, kind: input, shape index: {}]   ;;  %s1055_s4 = inlined_call_operand.vmem [shape: bf16[32,128], index: 4, kind: input, shape index: {}]   ;;  %s1056_s5 = inlined_call_operand.vmem [shape: f32[1,128], index: 5, kind: input, shape index: {}]   ;;  %s1057_s6 = inlined_call_operand.vmem [shape: f32[16,128], index: 6, kind: output, shape index: {}]  }
   0x1   :  { %757 = vmatprep.subr.bf16.mxu0 %v868_v0  ;;  %v811_v1 = vld [vmem:[%s1051_s1] sm:$0xff]   ;;  %773 = vmatprep.mubr.msk.bf16.mxu0 %vm869_vm0, %v868_v0  ;;  %v812_v2 = vld [vmem:[%s1051_s1 + $0x8] sm:$0xff]   ;;  %v813_v3 = vld [vmem:[%s1051_s1 + $0x10] sm:$0xff]  }
   0x2   :  { %777 = vmatprep.subr.bf16.mxu1 %v868_v0  ;;  %781 = vmatprep.mubr.msk.bf16.mxu1 %vm869_vm0, %v868_v0  ;;  %v814_v4 = vld [vmem:[%s1051_s1 + $0x18] sm:$0xff]   ;;  %v815_v5 = vld [vmem:[%s1051_s1 + $0x20] sm:$0xff]   ;;  %v816_v6 = vld [vmem:[%s1051_s1 + $0x28] sm:$0xff]  }
   0x3   :  { %758 = vmatpush3.bf16.msra.mxu0 %v811_v1  ;;  %v817_v7 = vld [vmem:[%s1051_s1 + $0x30] sm:$0xff]   ;;  %v818_v8 = vld [vmem:[%s1051_s1 + $0x38] sm:$0xff]   ;;  %v819_v9 = vld [vmem:[%s1052_s0] sm:$0xff]  }
   0x4   :  { %759 = vmatprep.subr.bf16.mxu0 %v868_v0  ;;  %v685_v10 = vld [vmem:[%s1053_s3] ss:$0 sm:$0xff]  ;;  %v821_v30 = vld [vmem:[%s1054_s2 + $0x8] sm:$0xff]   ;;  %v695_v38 = vld [vmem:[%s1053_s3 + $0x4] ss:$0 sm:$0xff] }
   0x5   :  { %v820_v29 = vld [vmem:[%s1054_s2] sm:$0xff]   ;;  %v696_v40 = vld [vmem:[%s1053_s3 + $0x8] ss:$0 sm:$0xff] }
   0x6   :  { %778 = vmatpush3.bf16.msra.mxu1 %v820_v29  ;;  %v700_v58 = vld [vmem:[%s1053_s3 + $0x1] ss:$0 sm:$0xff] }
   0x7   :  { %760 = vmatpush3.bf16.msra.mxu0 %v812_v2  ;;  %779 = vmatprep.subr.bf16.mxu1 %v868_v0 }
   0x8   :  { %761 = vmatprep.subr.bf16.mxu0 %v868_v0 }
   0xa   :  { %780 = vmatpush3.bf16.msra.mxu1 %v821_v30 }
   0xb   :  { %762 = vmatpush3.bf16.msra.mxu0 %v813_v3  ;;  %785 = vmatprep.subr.bf16.mxu1 %v868_v0 }
   0xc   :  { %763 = vmatprep.subr.bf16.mxu0 %v868_v0 }
   0xf   :  { %764 = vmatpush3.bf16.msra.mxu0 %v814_v4 }
  0x10   :  { %765 = vmatprep.subr.bf16.mxu0 %v868_v0 }
  0x13   :  { %766 = vmatpush3.bf16.msra.mxu0 %v815_v5 }
  0x14   :  { %767 = vmatprep.subr.bf16.mxu0 %v868_v0 }
  0x17   :  { %768 = vmatpush3.bf16.msra.mxu0 %v816_v6 }
  0x18   :  { %769 = vmatprep.subr.bf16.mxu0 %v868_v0 }
  0x1b   :  { %770 = vmatpush3.bf16.msra.mxu0 %v817_v7 }
  0x1c   :  { %771 = vmatprep.subr.bf16.mxu0 %v868_v0 }
  0x1f   :  { %772 = vmatpush3.bf16.msra.mxu0 %v818_v8 }
  0x22   :  { %774 = vmatmul.mubr.bf16.vlgmr.msra.gmra.mrb[0].mxu0 %v819_v9 }
  0xf5   :  { %v141_v11 = vpop.f32.mrb[0].mxu0 }
  0xf6   :  { %v142_v12 = vadd.f32 %v685_v10, %v141_v11  ;;  %v775_v13 = vpop.f32.mrb[1].mxu0 }
  0xf7   :  { %v144_v14 = vpop.f32.mrb[2].mxu0 }
  0xf8   :  { %v145_v15 = vadd.f32 %v685_v10, %v144_v14  ;;  %v776_v16 = vpop.f32.mrb[3].mxu0  ;;  %v149_v17 = vsel %vm148_vm1, %v142_v12, 0.0  ;;  %v822_v14 = vld [vmem:[%s1054_s2 + $0x10] sm:$0xff]  }
  0xf9   :  { %150 = vadd.xlane.f32.xlu0 %v149_v17 }
  0xfa   :  { %v152_v18 = vsel %vm148_vm1, %v145_v15, 0.0 }
  0xfd   :  { %153 = vadd.xlane.f32.xlu0 %v152_v18 }
 0x186   :  { %v151_v19 = vpop.xlane.xlu0 %150 }
 0x187   :  { %v156_v20 = vmul.f32 0.03125, %v151_v19 }
 0x189   :  { %v158_v21 = vsub.f32 %v142_v12, %v156_v20 }
 0x18a   :  { %v154_v22 = vpop.xlane.xlu0 %153 }
 0x18b   :  { %v157_v23 = vmul.f32 0.03125, %v154_v22  ;;  %v160_v24 = vmul.f32 %v158_v21, %v158_v21 }
 0x18d   :  { %v159_v25 = vsub.f32 %v145_v15, %v157_v23  ;;  %v162_v26 = vsel %vm148_vm1, %v160_v24, 0.0  ;;  %v823_v15 = vld [vmem:[%s1054_s2 + $0x18] sm:$0xff]   ;;  %v704_v23 = vld [vmem:[%s1053_s3 + $0x5] ss:$0 sm:$0xff] }
 0x18e   :  { %163 = vadd.xlane.f32.xlu1 %v162_v26  ;;  %v705_v26 = vld [vmem:[%s1053_s3 + $0x9] ss:$0 sm:$0xff] }
 0x18f   :  { %v161_v27 = vmul.f32 %v159_v25, %v159_v25 }
 0x191   :  { %v165_v28 = vsel %vm148_vm1, %v161_v27, 0.0 }
 0x192   :  { %166 = vadd.xlane.f32.xlu1 %v165_v28 }
 0x21b   :  { %v164_v31 = vpop.xlane.xlu1 %163 }
 0x21c   :  { %v168_v32 = vmul.f32 0.03125, %v164_v31 }
 0x21e   :  { %v170_v33 = vadd.f32 1e-05, %v168_v32 }
 0x21f   :  { %v167_v34 = vpop.xlane.xlu1 %166 }
 0x220   :  { %828 = vrsqrt.f32 %v170_v33  ;;  %v169_v35 = vmul.f32 0.03125, %v167_v34 }
 0x222   :  { %v171_v36 = vadd.f32 1e-05, %v169_v35 }
 0x224   :  { %830 = vrsqrt.f32 %v171_v36 }
 0x22a   :  { %v829_v37 = vpop.eup %828 }
 0x22b   :  { %v174_v39 = vmul.f32 %v829_v37, %v158_v21 }
 0x22d   :  { %v182_v41 = vmul.f32 %v695_v38, %v174_v39 }
 0x22e   :  { %v831_v42 = vpop.eup %830 }
 0x22f   :  { %v175_v43 = vmul.f32 %v831_v42, %v159_v25  ;;  %v190_v44 = vadd.f32 %v696_v40, %v182_v41 }
 0x231   :  { %v183_v45 = vmul.f32 %v695_v38, %v175_v43  ;;  %v194_v46 = vmul.f32 0.70710677, %v190_v44  ;;  %v192_v52 = vmul.f32 0.5, %v190_v44  ;;  %v713_v43 = vld [vmem:[%s1053_s3 + $0x2] ss:$0 sm:$0xff] }
 0x233   :  { %v191_v47 = vadd.f32 %v696_v40, %v183_v45  ;;  %832 = verf.f32 %v194_v46 }
 0x235   :  { %v195_v48 = vmul.f32 0.70710677, %v191_v47  ;;  %v193_v53 = vmul.f32 0.5, %v191_v47 }
 0x237   :  { %834 = verf.f32 %v195_v48 }
 0x23d   :  { %v833_v49 = vpop.eup %832 }
 0x23e   :  { %v198_v50 = vadd.f32 1.0, %v833_v49 }
 0x240   :  { %v200_v55 = vmul.f32 %v198_v50, %v192_v52 }
 0x241   :  { %v835_v51 = vpop.eup %834 }
 0x242   :  { %v199_v54 = vadd.f32 1.0, %v835_v51 }
 0x244   :  { %v201_v56 = vmul.f32 %v199_v54, %v193_v53 }
 0x246   :  { %v202_v57 = vpack.c.bf16 %v201_v56, %v200_v55 }
 0x248   :  { %782 = vmatmul.mubr.msk.bf16.vlgmr.msra.gmra.mrb[0].mxu1 %vm148_vm1, %v202_v57 }
 0x249   :  { %789 = vmatprep.mubr.msk.bf16.mxu1 %vm869_vm0, %v868_v0  ;;  %786 = vmatpush3.bf16.msra.mxu1 %v822_v14 }
 0x24a   :  { %787 = vmatprep.subr.bf16.mxu1 %v868_v0 }
 0x24d   :  { %788 = vmatpush3.bf16.msra.mxu1 %v823_v15 }
 0x24e   :  { %793 = vmatprep.subr.bf16.mxu1 %v868_v0 }
 0x31b   :  { %v268_v59 = vpop.f32.mrb[0].mxu1 }
 0x31c   :  { %v269_v60 = vadd.f32 %v700_v58, %v268_v59  ;;  %v783_v61 = vpop.f32.mrb[1].mxu1 }
 0x31d   :  { %v271_v62 = vpop.f32.mrb[2].mxu1 }
 0x31e   :  { %v272_v63 = vadd.f32 %v700_v58, %v271_v62  ;;  %v784_v1 = vpop.f32.mrb[3].mxu1  ;;  %v275_v2 = vsel %vm148_vm1, %v269_v60, 0.0  ;;  %v824_v62 = vld [vmem:[%s1054_s2 + $0x20] sm:$0xff]  }
 0x31f   :  { %276 = vadd.xlane.f32.xlu0 %v275_v2 }
 0x320   :  { %v278_v3 = vsel %vm148_vm1, %v272_v63, 0.0 }
 0x321   :  { %279 = vadd.xlane.f32.xlu1 %v278_v3 }
 0x3ac   :  { %v277_v4 = vpop.xlane.xlu0 %276 }
 0x3ad   :  { %v281_v5 = vmul.f32 0.03125, %v277_v4 }
 0x3ae   :  { %v280_v6 = vpop.xlane.xlu1 %279 }
 0x3af   :  { %v283_v7 = vsub.f32 %v269_v60, %v281_v5  ;;  %v282_v8 = vmul.f32 0.03125, %v280_v6 }
 0x3b1   :  { %v284_v9 = vsub.f32 %v272_v63, %v282_v8  ;;  %v285_v10 = vmul.f32 %v283_v7, %v283_v7  ;;  %v825_v63 = vld [vmem:[%s1054_s2 + $0x28] sm:$0xff]   ;;  %v717_v8 = vld [vmem:[%s1053_s3 + $0x6] ss:$0 sm:$0xff] }
 0x3b3   :  { %v287_v11 = vsel %vm148_vm1, %v285_v10, 0.0  ;;  %v286_v12 = vmul.f32 %v284_v9, %v284_v9 }
 0x3b4   :  { %288 = vadd.xlane.f32.xlu0 %v287_v11  ;;  %v718_v11 = vld [vmem:[%s1053_s3 + $0xa] ss:$0 sm:$0xff] }
 0x3b5   :  { %v290_v13 = vsel %vm148_vm1, %v286_v12, 0.0 }
 0x3b6   :  { %291 = vadd.xlane.f32.xlu1 %v290_v13 }
 0x441   :  { %v289_v16 = vpop.xlane.xlu0 %288 }
 0x442   :  { %v293_v17 = vmul.f32 0.03125, %v289_v16 }
 0x443   :  { %v292_v18 = vpop.xlane.xlu1 %291 }
 0x444   :  { %v295_v19 = vadd.f32 1e-05, %v293_v17  ;;  %v294_v20 = vmul.f32 0.03125, %v292_v18 }
 0x446   :  { %836 = vrsqrt.f32 %v295_v19  ;;  %v296_v21 = vadd.f32 1e-05, %v294_v20 }
 0x448   :  { %838 = vrsqrt.f32 %v296_v21 }
 0x450   :  { %v837_v22 = vpop.eup %836 }
 0x451   :  { %v299_v24 = vmul.f32 %v837_v22, %v283_v7 }
 0x452   :  { %v839_v25 = vpop.eup %838 }
 0x453   :  { %v307_v27 = vmul.f32 %v704_v23, %v299_v24  ;;  %v300_v28 = vmul.f32 %v839_v25, %v284_v9 }
 0x455   :  { %v315_v29 = vadd.f32 %v705_v26, %v307_v27  ;;  %v308_v30 = vmul.f32 %v704_v23, %v300_v28  ;;  %v726_v28 = vld [vmem:[%s1053_s3 + $0x3] ss:$0 sm:$0xff] }
 0x457   :  { %v319_v31 = vmul.f32 0.70710677, %v315_v29  ;;  %v316_v32 = vadd.f32 %v705_v26, %v308_v30  ;;  %v317_v37 = vmul.f32 0.5, %v315_v29 }
 0x459   :  { %v320_v33 = vmul.f32 0.70710677, %v316_v32  ;;  %840 = verf.f32 %v319_v31  ;;  %v318_v38 = vmul.f32 0.5, %v316_v32 }
 0x45b   :  { %842 = verf.f32 %v320_v33 }
 0x463   :  { %v841_v34 = vpop.eup %840 }
 0x464   :  { %v323_v35 = vadd.f32 1.0, %v841_v34 }
 0x465   :  { %v843_v36 = vpop.eup %842 }
 0x466   :  { %v324_v39 = vadd.f32 1.0, %v843_v36  ;;  %v325_v40 = vmul.f32 %v323_v35, %v317_v37 }
 0x468   :  { %v326_v41 = vmul.f32 %v324_v39, %v318_v38 }
 0x46a   :  { %v327_v42 = vpack.c.bf16 %v326_v41, %v325_v40 }
 0x46c   :  { %790 = vmatmul.mubr.msk.bf16.vlgmr.msra.gmra.mrb[4].mxu1 %vm148_vm1, %v327_v42 }
 0x46d   :  { %797 = vmatprep.mubr.msk.bf16.mxu1 %vm869_vm0, %v868_v0  ;;  %794 = vmatpush3.bf16.msra.mxu1 %v824_v62 }
 0x46e   :  { %795 = vmatprep.subr.bf16.mxu1 %v868_v0 }
 0x471   :  { %796 = vmatpush3.bf16.msra.mxu1 %v825_v63 }
 0x472   :  { %801 = vmatprep.subr.bf16.mxu1 %v868_v0 }
 0x53f   :  { %v394_v44 = vpop.f32.mrb[4].mxu1 }
 0x540   :  { %v395_v45 = vadd.f32 %v713_v43, %v394_v44  ;;  %v791_v46 = vpop.f32.mrb[5].mxu1 }
 0x541   :  { %v397_v47 = vpop.f32.mrb[6].mxu1 }
 0x542   :  { %v398_v48 = vadd.f32 %v713_v43, %v397_v47  ;;  %v792_v49 = vpop.f32.mrb[7].mxu1  ;;  %v401_v50 = vsel %vm148_vm1, %v395_v45, 0.0  ;;  %v826_v47 = vld [vmem:[%s1055_s4] sm:$0xff]  }
 0x543   :  { %402 = vadd.xlane.f32.xlu0 %v401_v50 }
 0x544   :  { %v404_v51 = vsel %vm148_vm1, %v398_v48, 0.0 }
 0x545   :  { %405 = vadd.xlane.f32.xlu1 %v404_v51 }
 0x5d0   :  { %v403_v52 = vpop.xlane.xlu0 %402 }
 0x5d1   :  { %v407_v53 = vmul.f32 0.03125, %v403_v52 }
 0x5d2   :  { %v406_v54 = vpop.xlane.xlu1 %405 }
 0x5d3   :  { %v409_v55 = vsub.f32 %v395_v45, %v407_v53  ;;  %v408_v56 = vmul.f32 0.03125, %v406_v54 }
 0x5d5   :  { %v410_v57 = vsub.f32 %v398_v48, %v408_v56  ;;  %v411_v58 = vmul.f32 %v409_v55, %v409_v55  ;;  %v827_v48 = vld [vmem:[%s1055_s4 + $0x8] sm:$0xff]   ;;  %v730_v56 = vld [vmem:[%s1053_s3 + $0x7] ss:$0 sm:$0xff] }
 0x5d7   :  { %v413_v59 = vsel %vm148_vm1, %v411_v58, 0.0  ;;  %v412_v60 = vmul.f32 %v410_v57, %v410_v57 }
 0x5d8   :  { %414 = vadd.xlane.f32.xlu0 %v413_v59 }
 0x5d9   :  { %v416_v61 = vsel %vm148_vm1, %v412_v60, 0.0 }
 0x5da   :  { %417 = vadd.xlane.f32.xlu1 %v416_v61 }
 0x665   :  { %v415_v1 = vpop.xlane.xlu0 %414 }
 0x666   :  { %v419_v2 = vmul.f32 0.03125, %v415_v1 }
 0x667   :  { %v418_v3 = vpop.xlane.xlu1 %417 }
 0x668   :  { %v421_v4 = vadd.f32 1e-05, %v419_v2  ;;  %v420_v5 = vmul.f32 0.03125, %v418_v3 }
 0x66a   :  { %844 = vrsqrt.f32 %v421_v4  ;;  %v422_v6 = vadd.f32 1e-05, %v420_v5 }
 0x66c   :  { %846 = vrsqrt.f32 %v422_v6 }
 0x674   :  { %v845_v7 = vpop.eup %844 }
 0x675   :  { %v425_v9 = vmul.f32 %v845_v7, %v409_v55 }
 0x676   :  { %v847_v10 = vpop.eup %846 }
 0x677   :  { %v433_v12 = vmul.f32 %v717_v8, %v425_v9  ;;  %v426_v13 = vmul.f32 %v847_v10, %v410_v57 }
 0x679   :  { %v441_v14 = vadd.f32 %v718_v11, %v433_v12  ;;  %v434_v15 = vmul.f32 %v717_v8, %v426_v13  ;;  %v647_v12 = vlaneseq }
 0x67b   :  { %v445_v16 = vmul.f32 0.70710677, %v441_v14  ;;  %v442_v17 = vadd.f32 %v718_v11, %v434_v15  ;;  %v443_v22 = vmul.f32 0.5, %v441_v14  ;;  %v648_v13 = vand.u32 127, %v647_v12  ;;  %v732_v14 = vld [vmem:[%s1056_s5] ss:$0 sm:$0xff] }
 0x67d   :  { %v446_v18 = vmul.f32 0.70710677, %v442_v17  ;;  %848 = verf.f32 %v445_v16  ;;  %v444_v23 = vmul.f32 0.5, %v442_v17  ;;  %vm672_vm2 = vcmp.eq.s32.totalorder %v648_v13, 6 }
 0x67e   :  { %vm649_vm3 = vcmp.lt.s32.totalorder %v648_v13, 6 }
 0x67f   :  { %850 = verf.f32 %v446_v18 }
 0x687   :  { %v849_v19 = vpop.eup %848 }
 0x688   :  { %v449_v20 = vadd.f32 1.0, %v849_v19 }
 0x689   :  { %v851_v21 = vpop.eup %850 }
 0x68a   :  { %v450_v24 = vadd.f32 1.0, %v851_v21  ;;  %v451_v25 = vmul.f32 %v449_v20, %v443_v22 }
 0x68c   :  { %v452_v26 = vmul.f32 %v450_v24, %v444_v23 }
 0x68e   :  { %v453_v27 = vpack.c.bf16 %v452_v26, %v451_v25 }
 0x690   :  { %798 = vmatmul.mubr.msk.bf16.vlgmr.msra.gmra.mrb[8].mxu1 %vm148_vm1, %v453_v27 }
 0x691   :  { %805 = vmatprep.mubr.msk.bf16.mxu1 %vm869_vm0, %v868_v0  ;;  %802 = vmatpush3.bf16.msra.mxu1 %v826_v47 }
 0x692   :  { %803 = vmatprep.subr.bf16.mxu1 %v868_v0  ;;  %v731_v0 = vld [vmem:[%s1053_s3 + $0xb] ss:$0 sm:$0xff] }
 0x695   :  { %804 = vmatpush3.bf16.msra.mxu1 %v827_v48 }
 0x763   :  { %v520_v29 = vpop.f32.mrb[8].mxu1 }
 0x764   :  { %v521_v30 = vadd.f32 %v726_v28, %v520_v29  ;;  %v799_v31 = vpop.f32.mrb[9].mxu1 }
 0x765   :  { %v523_v32 = vpop.f32.mrb[10].mxu1 }
 0x766   :  { %v524_v33 = vadd.f32 %v726_v28, %v523_v32  ;;  %v800_v34 = vpop.f32.mrb[11].mxu1  ;;  %v527_v35 = vsel %vm148_vm1, %v521_v30, 0.0 }
 0x767   :  { %528 = vadd.xlane.f32.xlu0 %v527_v35 }
 0x768   :  { %v530_v36 = vsel %vm148_vm1, %v524_v33, 0.0 }
 0x769   :  { %531 = vadd.xlane.f32.xlu1 %v530_v36 }
 0x7f4   :  { %v529_v37 = vpop.xlane.xlu0 %528 }
 0x7f5   :  { %v533_v38 = vmul.f32 0.03125, %v529_v37 }
 0x7f6   :  { %v532_v39 = vpop.xlane.xlu1 %531 }
 0x7f7   :  { %v535_v40 = vsub.f32 %v521_v30, %v533_v38  ;;  %v534_v41 = vmul.f32 0.03125, %v532_v39 }
 0x7f9   :  { %v536_v42 = vsub.f32 %v524_v33, %v534_v41  ;;  %v537_v43 = vmul.f32 %v535_v40, %v535_v40 }
 0x7fb   :  { %v539_v44 = vsel %vm148_vm1, %v537_v43, 0.0  ;;  %v538_v45 = vmul.f32 %v536_v42, %v536_v42 }
 0x7fc   :  { %540 = vadd.xlane.f32.xlu0 %v539_v44 }
 0x7fd   :  { %v542_v46 = vsel %vm148_vm1, %v538_v45, 0.0 }
 0x7fe   :  { %543 = vadd.xlane.f32.xlu1 %v542_v46 }
 0x889   :  { %v541_v49 = vpop.xlane.xlu0 %540 }
 0x88a   :  { %v545_v50 = vmul.f32 0.03125, %v541_v49 }
 0x88b   :  { %v544_v51 = vpop.xlane.xlu1 %543 }
 0x88c   :  { %v547_v52 = vadd.f32 1e-05, %v545_v50  ;;  %v546_v53 = vmul.f32 0.03125, %v544_v51 }
 0x88e   :  { %852 = vrsqrt.f32 %v547_v52  ;;  %v548_v54 = vadd.f32 1e-05, %v546_v53 }
 0x890   :  { %854 = vrsqrt.f32 %v548_v54 }
 0x898   :  { %v853_v55 = vpop.eup %852 }
 0x899   :  { %v551_v57 = vmul.f32 %v853_v55, %v535_v40 }
 0x89a   :  { %v855_v58 = vpop.eup %854 }
 0x89b   :  { %v559_v59 = vmul.f32 %v730_v56, %v551_v57  ;;  %v552_v60 = vmul.f32 %v855_v58, %v536_v42 }
 0x89d   :  { %v567_v61 = vadd.f32 %v731_v0, %v559_v59  ;;  %v560_v62 = vmul.f32 %v730_v56, %v552_v60 }
 0x89f   :  { %v571_v63 = vmul.f32 0.70710677, %v567_v61  ;;  %v568_v1 = vadd.f32 %v731_v0, %v560_v62  ;;  %v569_v6 = vmul.f32 0.5, %v567_v61 }
 0x8a1   :  { %v572_v2 = vmul.f32 0.70710677, %v568_v1  ;;  %856 = verf.f32 %v571_v63  ;;  %v570_v7 = vmul.f32 0.5, %v568_v1 }
 0x8a3   :  { %858 = verf.f32 %v572_v2 }
 0x8ab   :  { %v857_v3 = vpop.eup %856 }
 0x8ac   :  { %v575_v4 = vadd.f32 1.0, %v857_v3 }
 0x8ad   :  { %v859_v5 = vpop.eup %858 }
 0x8ae   :  { %v576_v8 = vadd.f32 1.0, %v859_v5  ;;  %v577_v9 = vmul.f32 %v575_v4, %v569_v6 }
 0x8b0   :  { %v578_v10 = vmul.f32 %v576_v8, %v570_v7 }
 0x8b2   :  { %v579_v11 = vpack.c.bf16 %v578_v10, %v577_v9 }
 0x8b4   :  { %806 = vmatmul.mubr.msk.bf16.vlgmr.msra.gmra.mrb[12].mxu1 %vm148_vm1, %v579_v11 }
 0x987   :  { %v640_v15 = vpop.f32.mrb[12].mxu1 }
 0x988   :  { %v641_v16 = vadd.f32 %v732_v14, %v640_v15  ;;  %v807_v17 = vpop.f32.mrb[13].mxu1 }
 0x989   :  { %v643_v18 = vpop.f32.mrb[14].mxu1 }
 0x98a   :  { %v673_v19 = vsel %vm672_vm2, %v641_v16, 0.0  ;;  %v644_v20 = vadd.f32 %v732_v14, %v643_v18  ;;  %v808_v21 = vpop.f32.mrb[15].mxu1  ;;  %v650_v22 = vsel %vm649_vm3, %v641_v16, -inf }
 0x98b   :  { %652 = vmax.xlane.f32.xlu0 %v650_v22 }
 0x98c   :  { %v674_v23 = vsel %vm672_vm2, %v644_v20, 0.0  ;;  %v651_v24 = vsel %vm649_vm3, %v644_v20, -inf }
 0x98d   :  { %654 = vmax.xlane.f32.xlu1 %v651_v24 }
 0xa18   :  { %v653_v25 = vpop.xlane.xlu0 %652 }
 0xa19   :  { %v656_v26 = vsub.f32 %v650_v22, %v653_v25 }
 0xa1a   :  { %v655_v27 = vpop.xlane.xlu1 %654 }
 0xa1b   :  { %v658_v28 = vmul.f32 1.442695, %v656_v26  ;;  %v657_v29 = vsub.f32 %v651_v24, %v655_v27 }
 0xa1d   :  { %860 = vpow2.f32 %v658_v28  ;;  %v660_v30 = vmul.f32 1.442695, %v657_v29 }
 0xa1f   :  { %862 = vpow2.f32 %v660_v30 }
 0xa27   :  { %v861_v31 = vpop.eup %860 }
 0xa28   :  { %v662_v32 = vsel %vm649_vm3, %v861_v31, 0.0 }
 0xa29   :  { %v863_v33 = vpop.eup %862  ;;  %664 = vadd.xlane.f32.xlu0 %v662_v32 }
 0xa2a   :  { %v663_v34 = vsel %vm649_vm3, %v863_v33, 0.0 }
 0xa2b   :  { %666 = vadd.xlane.f32.xlu1 %v663_v34 }
 0xab6   :  { %v665_v35 = vpop.xlane.xlu0 %664 }
 0xab7   :  { %864 = vrcp.f32 %v665_v35 }
 0xab8   :  { %v667_v36 = vpop.xlane.xlu1 %666 }
 0xab9   :  { %866 = vrcp.f32 %v667_v36 }
 0xac1   :  { %v865_v37 = vpop.eup %864 }
 0xac2   :  { %v669_v38 = vmul.f32 %v865_v37, %v662_v32 }
 0xac3   :  { %v867_v39 = vpop.eup %866 }
 0xac4   :  { %v675_v40 = vadd.f32 %v673_v19, %v669_v38  ;;  %v671_v41 = vmul.f32 %v867_v39, %v663_v34 }
 0xac6   :  { %677 = vst [vmem:[%s1057_s6] sm:$0xff] %v675_v40  ;;  %v676_v42 = vadd.f32 %v674_v23, %v671_v41 }
 0xac8   :  { %678 = vst [vmem:[%s1057_s6 + $0x8] sm:$0xff] %v676_v42 }

</bundles_post_ra>
